<compile_context>
chip_gen: v6e
topology: v6e:2x2x1
jax: 0.10.0
libtpu: 0.0.40
codegen_flags: <defaults>
</compile_context>

<pallas_src>
import functools

import jax
import jax.numpy as jnp
from jax.experimental import pallas as pl
from jax.experimental.pallas import tpu as pltpu


def _round_up(n, m):
    return ((n + m - 1) // m) * m


def policy_net_kernel(x_ref, w1_ref, b1_ref, w2_ref, b2_ref, w3_ref, b3_ref, o_ref):
    # fc1 + ReLU   (bf16 MXU operands, f32 accumulate / bias / relu)
    x = x_ref[...].astype(jnp.bfloat16)           # in-kernel cast, no extra HBM pass
    h1 = jnp.dot(x, w1_ref[...], preferred_element_type=jnp.float32)
    h1 = jnp.maximum(h1 + b1_ref[...], 0.0).astype(jnp.bfloat16)

    # fc2 + ReLU
    h2 = jnp.dot(h1, w2_ref[...], preferred_element_type=jnp.float32)
    h2 = jnp.maximum(h2 + b2_ref[...], 0.0).astype(jnp.bfloat16)

    # fc3 (output padded to 128 lanes; padded bias = -1e30 so exp() -> 0 there)
    logits = jnp.dot(h2, w3_ref[...], preferred_element_type=jnp.float32) + b3_ref[...]

    # numerically stable softmax along the last dim (exact divide in f32;
    # only the final bf16 store rounds the probabilities)
    m = jnp.max(logits, axis=-1, keepdims=True)
    e = jnp.exp(logits - m)
    denom = jnp.sum(e, axis=-1, keepdims=True)
    o_ref[...] = (e / denom).astype(o_ref.dtype)


def prepare_params(params, *, d_in_pad=128, d_out_pad=128):
    """One-time (per parameter update) weight prep: bf16 casts + lane padding."""
    w1, b1 = params["w1"], params["b1"]
    w2, b2 = params["w2"], params["b2"]
    w3, b3 = params["w3"], params["b3"]
    d_in, hid = w1.shape
    d_out = w3.shape[1]
    assert d_in <= d_in_pad and d_out <= d_out_pad

    # fc1: pad K (input dim) 48 -> 128 with zero rows; lane-aligned matmul K.
    w1_pad = jnp.zeros((d_in_pad, hid), jnp.bfloat16).at[:d_in, :].set(
        w1.astype(jnp.bfloat16))
    # fc3: pad N to 128 lanes; zero weight columns, -1e30 bias on padding so
    # the padded lanes receive zero softmax mass.
    w3_pad = jnp.zeros((hid, d_out_pad), jnp.bfloat16).at[:, :d_out].set(
        w3.astype(jnp.bfloat16))
    b3_pad = jnp.full((1, d_out_pad), -1e30, jnp.float32).at[:, :d_out].set(
        b3.reshape(1, -1).astype(jnp.float32))

    prepped = {
        "w1": w1_pad,
        "b1": b1.reshape(1, -1).astype(jnp.float32),
        "w2": w2.astype(jnp.bfloat16),
        "b2": b2.reshape(1, -1).astype(jnp.float32),
        "w3": w3_pad,
        "b3": b3_pad,
    }
    return prepped, d_out


@functools.partial(jax.jit, static_argnames=("d_out",))
def policy_network_forward(x, prepped, *, d_out):
    """x: [B, input_dim] float32.  prepped: output of prepare_params().

    Returns softmax probabilities [B, d_out] in float32.
    """
    B, d_in = x.shape
    d_in_pad, hid = prepped["w1"].shape
    d_out_pad = prepped["w3"].shape[1]

    # Adaptive batch tiling (static under jit since shapes are static):
    #  - small RL-step batches: pad only to a multiple of 16, single grid step.
    #  - throughput batches: large blocks, but keep >= 2 grid steps so the
    #    batch axis can be megacore-sharded on v7x.
    if B <= 128:
        block_b = _round_up(max(B, 16), 16)
        B_pad = block_b
    else:
        block_b = min(512, _round_up(B, 16) // 2)
        block_b = max(16, (block_b // 16) * 16)
        B_pad = _round_up(B, block_b)
    n_blocks = B_pad // block_b

    if B_pad != B or d_in_pad != d_in:
        x = jnp.pad(x, ((0, B_pad - B), (0, d_in_pad - d_in)))

    out = pl.pallas_call(
        policy_net_kernel,
        out_shape=jax.ShapeDtypeStruct((B_pad, d_out_pad), jnp.bfloat16),
        grid_spec=pltpu.PrefetchScalarGridSpec(
            num_scalar_prefetch=0,
            grid=(n_blocks,),
            in_specs=[
                pl.BlockSpec((block_b, d_in_pad), lambda i: (i, 0)),   # x tile (f32)
                pl.BlockSpec((d_in_pad, hid),     lambda i: (0, 0)),   # w1 (resident bf16)
                pl.BlockSpec((1, hid),            lambda i: (0, 0)),   # b1 (f32)
                pl.BlockSpec((hid, hid),          lambda i: (0, 0)),   # w2 (resident bf16)
                pl.BlockSpec((1, hid),            lambda i: (0, 0)),   # b2 (f32)
                pl.BlockSpec((hid, d_out_pad),    lambda i: (0, 0)),   # w3 (padded bf16)
                pl.BlockSpec((1, d_out_pad),      lambda i: (0, 0)),   # b3 (padded f32)
            ],
            out_specs=pl.BlockSpec((block_b, d_out_pad), lambda i: (i, 0)),
        ),
        compiler_params=pltpu.CompilerParams(
            dimension_semantics=("parallel",),   # shard batch blocks across TCs on v7x
        ),
    )(x, prepped["w1"], prepped["b1"], prepped["w2"], prepped["b2"],
      prepped["w3"], prepped["b3"])

    return out[:B, :d_out].astype(jnp.float32)


def init_params(key, input_dim, output_dim, hidden_dim=128):
    """Deterministic init. Weights stored as [in, out] (transposed vs PyTorch)."""
    k1, k2, k3, k4, k5, k6 = jax.random.split(key, 6)
    scale1 = 1.0 / jnp.sqrt(input_dim)
    scale2 = 1.0 / jnp.sqrt(hidden_dim)
    return {
        "w1": jax.random.uniform(k1, (input_dim, hidden_dim), jnp.float32, -scale1, scale1),
        "b1": jax.random.uniform(k2, (1, hidden_dim), jnp.float32, -scale1, scale1),
        "w2": jax.random.uniform(k3, (hidden_dim, hidden_dim), jnp.float32, -scale2, scale2),
        "b2": jax.random.uniform(k4, (1, hidden_dim), jnp.float32, -scale2, scale2),
        "w3": jax.random.uniform(k5, (hidden_dim, output_dim), jnp.float32, -scale2, scale2),
        "b3": jax.random.uniform(k6, (1, output_dim), jnp.float32, -scale2, scale2),
    }


def reference_forward_f32(x, p):
    h1 = jnp.maximum(x @ p["w1"] + p["b1"], 0.0)
    h2 = jnp.maximum(h1 @ p["w2"] + p["b2"], 0.0)
    logits = h2 @ p["w3"] + p["b3"]
    return jax.nn.softmax(logits, axis=-1)


def reference_forward_bf16(x, p):
    """Mirrors the kernel's precision: bf16 matmul operands, f32 accumulate."""
    def mm(a, w):
        return jnp.dot(a.astype(jnp.bfloat16), w.astype(jnp.bfloat16),
                       preferred_element_type=jnp.float32)
    h1 = jnp.maximum(mm(x, p["w1"]) + p["b1"], 0.0)
    h2 = jnp.maximum(mm(h1, p["w2"]) + p["b2"], 0.0)
    logits = mm(h2, p["w3"]) + p["b3"]
    return jax.nn.softmax(logits, axis=-1)


if __name__ == "__main__":
    # CliffWalking: 48 states (one-hot input), 4 actions, hidden 128.
    INPUT_DIM, OUTPUT_DIM, HIDDEN_DIM = 48, 4, 128

    key = jax.random.PRNGKey(0)
    kx1, kx2, kp = jax.random.split(key, 3)
    params = init_params(kp, INPUT_DIM, OUTPUT_DIM, HIDDEN_DIM)
    prepped, d_out = prepare_params(params)      # per-update weight prep, done once

    # Case 1: tiny RL-step batch (block_b=16 small-batch path, grid=1).
    x_small = jax.random.normal(kx1, (8, INPUT_DIM), dtype=jnp.float32)
    # Case 2: larger batch (block_b=128, grid=2 -> both TensorCores on v7x).
    x_large = jax.random.normal(kx2, (256, INPUT_DIM), dtype=jnp.float32)

    for x in (x_small, x_large):
        out = jax.block_until_ready(
            policy_network_forward(x, prepped, d_out=OUTPUT_DIM))
        assert out.shape == (x.shape[0], OUTPUT_DIM)
        # rows sum to ~1 (exact divide in-kernel; bf16 store rounding only)
        assert jnp.allclose(jnp.sum(out, axis=-1), 1.0, atol=1e-2)
        # matches a precision-matched (bf16 matmul / f32 accumulate) reference
        ref_bf16 = reference_forward_bf16(x, params)
        assert jnp.allclose(out, ref_bf16, atol=2e-2), (
            float(jnp.max(jnp.abs(out - ref_bf16))))
        # and is close to the full-f32 reference
        ref_f32 = reference_forward_f32(x, params)
        assert jnp.allclose(out, ref_f32, atol=5e-2), (
            float(jnp.max(jnp.abs(out - ref_f32))))

    print("KERNEL_OK")
</pallas_src>

<mosaic_0001>
module attributes {stable_mosaic.version = 11 : i64} {
  func.func @policy_net_kernel(%arg0: i32, %arg1: memref<16x128xf32, #tpu.memory_space<vmem>>, %arg2: memref<128x128xbf16, #tpu.memory_space<vmem>>, %arg3: memref<1x128xf32, #tpu.memory_space<vmem>>, %arg4: memref<128x128xbf16, #tpu.memory_space<vmem>>, %arg5: memref<1x128xf32, #tpu.memory_space<vmem>>, %arg6: memref<128x128xbf16, #tpu.memory_space<vmem>>, %arg7: memref<1x128xf32, #tpu.memory_space<vmem>>, %arg8: memref<16x128xbf16, #tpu.memory_space<vmem>>) attributes {dimension_semantics = [#tpu.dimension_semantics<parallel>], iteration_bounds = array<i64: 1>, scalar_prefetch = 0 : i64, scratch_operands = 0 : i64, tpu.core_type = #tpu.core_type<tc>, window_params = [{transform_indices = @transform_0, window_bounds = array<i64: 16, 128>}, {pipeline_mode = #tpu.pipeline_mode<synchronous>, transform_indices = @transform_1, window_bounds = array<i64: 128, 128>}, {pipeline_mode = #tpu.pipeline_mode<synchronous>, transform_indices = @transform_2, window_bounds = array<i64: 1, 128>}, {pipeline_mode = #tpu.pipeline_mode<synchronous>, transform_indices = @transform_3, window_bounds = array<i64: 128, 128>}, {pipeline_mode = #tpu.pipeline_mode<synchronous>, transform_indices = @transform_4, window_bounds = array<i64: 1, 128>}, {pipeline_mode = #tpu.pipeline_mode<synchronous>, transform_indices = @transform_5, window_bounds = array<i64: 128, 128>}, {pipeline_mode = #tpu.pipeline_mode<synchronous>, transform_indices = @transform_6, window_bounds = array<i64: 1, 128>}, {transform_indices = @transform_7, window_bounds = array<i64: 16, 128>}]} {
    %c0 = arith.constant 0 : index
    %c0_0 = arith.constant 0 : index
    %0 = vector.load %arg1[%c0, %c0_0] : memref<16x128xf32, #tpu.memory_space<vmem>>, vector<16x128xf32>
    %1 = arith.truncf %0 : vector<16x128xf32> to vector<16x128xbf16>
    %c0_1 = arith.constant 0 : index
    %c0_2 = arith.constant 0 : index
    %2 = vector.load %arg2[%c0_1, %c0_2] : memref<128x128xbf16, #tpu.memory_space<vmem>>, vector<128x128xbf16>
    %cst = arith.constant dense<0.000000e+00> : vector<16x128xf32>
    %3 = tpu.matmul %1, %2, %cst {dimension_numbers = #tpu.dot_dimension_numbers<[1], [0], [0], [1], [0, 0, 1, 1], [], []>} : vector<16x128xbf16>, vector<128x128xbf16>, vector<16x128xf32> -> vector<16x128xf32>
    %c0_3 = arith.constant 0 : index
    %c0_4 = arith.constant 0 : index
    %4 = vector.load %arg3[%c0_3, %c0_4] : memref<1x128xf32, #tpu.memory_space<vmem>>, vector<1x128xf32>
    %5 = vector.broadcast %4 : vector<1x128xf32> to vector<16x128xf32>
    %6 = arith.addf %3, %5 : vector<16x128xf32>
    %cst_5 = arith.constant 0.000000e+00 : f32
    %7 = vector.broadcast %cst_5 : f32 to vector<16x128xf32>
    %8 = arith.maximumf %6, %7 : vector<16x128xf32>
    %9 = arith.truncf %8 : vector<16x128xf32> to vector<16x128xbf16>
    %c0_6 = arith.constant 0 : index
    %c0_7 = arith.constant 0 : index
    %10 = vector.load %arg4[%c0_6, %c0_7] : memref<128x128xbf16, #tpu.memory_space<vmem>>, vector<128x128xbf16>
    %cst_8 = arith.constant dense<0.000000e+00> : vector<16x128xf32>
    %11 = tpu.matmul %9, %10, %cst_8 {dimension_numbers = #tpu.dot_dimension_numbers<[1], [0], [0], [1], [0, 0, 1, 1], [], []>} : vector<16x128xbf16>, vector<128x128xbf16>, vector<16x128xf32> -> vector<16x128xf32>
    %c0_9 = arith.constant 0 : index
    %c0_10 = arith.constant 0 : index
    %12 = vector.load %arg5[%c0_9, %c0_10] : memref<1x128xf32, #tpu.memory_space<vmem>>, vector<1x128xf32>
    %13 = vector.broadcast %12 : vector<1x128xf32> to vector<16x128xf32>
    %14 = arith.addf %11, %13 : vector<16x128xf32>
    %cst_11 = arith.constant 0.000000e+00 : f32
    %15 = vector.broadcast %cst_11 : f32 to vector<16x128xf32>
    %16 = arith.maximumf %14, %15 : vector<16x128xf32>
    %17 = arith.truncf %16 : vector<16x128xf32> to vector<16x128xbf16>
    %c0_12 = arith.constant 0 : index
    %c0_13 = arith.constant 0 : index
    %18 = vector.load %arg6[%c0_12, %c0_13] : memref<128x128xbf16, #tpu.memory_space<vmem>>, vector<128x128xbf16>
    %cst_14 = arith.constant dense<0.000000e+00> : vector<16x128xf32>
    %19 = tpu.matmul %17, %18, %cst_14 {dimension_numbers = #tpu.dot_dimension_numbers<[1], [0], [0], [1], [0, 0, 1, 1], [], []>} : vector<16x128xbf16>, vector<128x128xbf16>, vector<16x128xf32> -> vector<16x128xf32>
    %c0_15 = arith.constant 0 : index
    %c0_16 = arith.constant 0 : index
    %20 = vector.load %arg7[%c0_15, %c0_16] : memref<1x128xf32, #tpu.memory_space<vmem>>, vector<1x128xf32>
    %21 = vector.broadcast %20 : vector<1x128xf32> to vector<16x128xf32>
    %22 = arith.addf %19, %21 : vector<16x128xf32>
    %cst_17 = arith.constant dense<0xFF800000> : vector<16xf32>
    %23 = vector.multi_reduction <maximumf>, %22, %cst_17 [1] : vector<16x128xf32> to vector<16xf32>
    %24 = vector.shape_cast %23 : vector<16xf32> to vector<16x1xf32>
    %25 = vector.broadcast %24 : vector<16x1xf32> to vector<16x128xf32>
    %26 = arith.subf %22, %25 : vector<16x128xf32>
    %27 = math.exp %26 : vector<16x128xf32>
    %cst_18 = arith.constant dense<0.000000e+00> : vector<16xf32>
    %28 = vector.multi_reduction <add>, %27, %cst_18 [1] : vector<16x128xf32> to vector<16xf32>
    %29 = vector.shape_cast %28 : vector<16xf32> to vector<16x1xf32>
    %30 = vector.broadcast %29 : vector<16x1xf32> to vector<16x128xf32>
    %31 = arith.divf %27, %30 : vector<16x128xf32>
    %32 = arith.truncf %31 : vector<16x128xf32> to vector<16x128xbf16>
    %c0_19 = arith.constant 0 : index
    %c0_20 = arith.constant 0 : index
    %33 = vector.load %arg8[%c0_19, %c0_20] : memref<16x128xbf16, #tpu.memory_space<vmem>>, vector<16x128xbf16>
    tpu.vector_store %arg8[%c0_19, %c0_20], %32 {strides = array<i32>} : memref<16x128xbf16, #tpu.memory_space<vmem>>, vector<16x128xbf16>,
    return
  }
  func.func @transform_0(%arg0: i32) -> (i32, i32) {
    %c0_i32 = arith.constant 0 : i32
    %c0_i32_0 = arith.constant 0 : i32
    return %arg0, %c0_i32 : i32, i32
  }
  func.func @transform_1(%arg0: i32) -> (i32, i32) {
    %c0_i32 = arith.constant 0 : i32
    %c0_i32_0 = arith.constant 0 : i32
    %c0_i32_1 = arith.constant 0 : i32
    return %c0_i32, %c0_i32_0 : i32, i32
  }
  func.func @transform_2(%arg0: i32) -> (i32, i32) {
    %c0_i32 = arith.constant 0 : i32
    %c0_i32_0 = arith.constant 0 : i32
    %c0_i32_1 = arith.constant 0 : i32
    return %c0_i32, %c0_i32_0 : i32, i32
  }
  func.func @transform_3(%arg0: i32) -> (i32, i32) {
    %c0_i32 = arith.constant 0 : i32
    %c0_i32_0 = arith.constant 0 : i32
    %c0_i32_1 = arith.constant 0 : i32
    return %c0_i32, %c0_i32_0 : i32, i32
  }
  func.func @transform_4(%arg0: i32) -> (i32, i32) {
    %c0_i32 = arith.constant 0 : i32
    %c0_i32_0 = arith.constant 0 : i32
    %c0_i32_1 = arith.constant 0 : i32
    return %c0_i32, %c0_i32_0 : i32, i32
  }
  func.func @transform_5(%arg0: i32) -> (i32, i32) {
    %c0_i32 = arith.constant 0 : i32
    %c0_i32_0 = arith.constant 0 : i32
    %c0_i32_1 = arith.constant 0 : i32
    return %c0_i32, %c0_i32_0 : i32, i32
  }
  func.func @transform_6(%arg0: i32) -> (i32, i32) {
    %c0_i32 = arith.constant 0 : i32
    %c0_i32_0 = arith.constant 0 : i32
    %c0_i32_1 = arith.constant 0 : i32
    return %c0_i32, %c0_i32_0 : i32, i32
  }
  func.func @transform_7(%arg0: i32) -> (i32, i32) {
    %c0_i32 = arith.constant 0 : i32
    %c0_i32_0 = arith.constant 0 : i32
    return %arg0, %c0_i32 : i32, i32
  }
}

</mosaic_0001>

<bundles_post_ra>
// kernel: policy_network_forward.1
= control target key start
LH: loop header
LB: loop body
LE: loop exit
PB: predicated region body
PF: predicated region fallthrough
CT: control target
= control target key end

     0   :  { %12 = vsyncpa [#allocation3], 0  ;;  %s777_s0 = inlined_call_operand.vmem [shape: f32[16,128], index: 0, kind: input, shape index: {}]   ;;  %s778_s1 = inlined_call_operand.hbm [shape: bf16[128,128], index: 1, kind: input, shape index: {}]   ;;  %s779_s2 = inlined_call_operand.vmem [shape: f32[1,128], index: 2, kind: input, shape index: {}]   ;;  %s780_s3 = inlined_call_operand.hbm [shape: bf16[128,128], index: 3, kind: input, shape index: {}]   ;;  %s781_s4 = inlined_call_operand.vmem [shape: f32[1,128], index: 4, kind: input, shape index: {}]   ;;  %s782_s5 = inlined_call_operand.hbm [shape: bf16[128,128], index: 5, kind: input, shape index: {}]   ;;  %s783_s6 = inlined_call_operand.vmem [shape: f32[1,128], index: 6, kind: input, shape index: {}]   ;;  %s784_s7 = inlined_call_operand.vmem [shape: bf16[16,128], index: 7, kind: output, shape index: {}]  }
   0x1   :  { %13 = vsyncpa [#allocation5], 0  ;;  %s673_s24 = smov [#allocation4]   ;;  %s674_s26 = smov [#allocation2]  }
   0x2   :  { %s35_s25 = sshll.u32 %s673_s24, 4  ;;  %s21_s27 = sshll.u32 %s674_s26, 4  ;;  %s36_s25 = int_to_ptr.vmem [resolvable:$true] %s35_s25  ;;  %s22_s27 = int_to_ptr.vmem [resolvable:$true] %s21_s27 }
   0x3   :  { %s617_s28 = scalar_lea.vmem %s36_s25, 1024  ;;  %p622_p1 = scmp.lt.s32.totalorder %s36_s25, %s36_s25 }
   0x4   :  { %p618_p0 = scmp.ne.s32.totalorder %s36_s25, %s617_s28  ;;  %p623_p2 = scmp.lt.s32.totalorder %s617_s28, %s617_s28 }
   0x6   :  { %p624_p3 = por %p623_p2, %p622_p1 }
   0x8   :  { %p625_p4 = pnand %p624_p3, %p618_p0 }
   0xa   :  { %628 = shalt.err (!%p625_p4)
}
   0xb   :  { %s675_s29 = smov 64   ;;  %s676_s30 = smov 4  }
   0xc   :  { %41 = dma.hbm_to_vmem [thread:$0]  %s780_s3, 1024, %s36_s25, [#allocation5], %s675_s29, %s675_s29, %s676_s30  }
   0xd   :  { %s637_s10 = scalar_lea.vmem %s22_s27, 1024  ;;  %p642_p6 = scmp.lt.s32.totalorder %s22_s27, %s22_s27 }
   0xe   :  { %p638_p5 = scmp.ne.s32.totalorder %s22_s27, %s637_s10  ;;  %p643_p7 = scmp.lt.s32.totalorder %s637_s10, %s637_s10 }
  0x10   :  { %p644_p8 = por %p643_p7, %p642_p6 }
  0x12   :  { %p645_p9 = pnand %p644_p8, %p638_p5 }
  0x14   :  { %648 = shalt.err (!%p645_p9)
}
  0x15   :  { %27 = dma.hbm_to_vmem [thread:$0]  %s778_s1, 1024, %s22_s27, [#allocation3], %s675_s29, %s675_s29, %s676_s30  }
  0x16   :  { %s677_s13 = smov [#allocation6]  }
  0x17   :  { %s49_s14 = sshll.u32 %s677_s13, 4  ;;  %s50_s14 = int_to_ptr.vmem [resolvable:$true] %s49_s14 }
  0x18   :  { %s657_s15 = scalar_lea.vmem %s50_s14, 1024  ;;  %p662_p11 = scmp.lt.s32.totalorder %s50_s14, %s50_s14 }
  0x19   :  { %p658_p10 = scmp.ne.s32.totalorder %s50_s14, %s657_s15  ;;  %p663_p12 = scmp.lt.s32.totalorder %s657_s15, %s657_s15 }
  0x1b   :  { %p664_p13 = por %p663_p12, %p662_p11 }
  0x1d   :  { %p665_p0 = pnand %p664_p13, %p658_p10 }
  0x1f   :  { %668 = shalt.err (!%p665_p0)
}
  0x20   :  { %55 = dma.hbm_to_vmem [thread:$0]  %s782_s5, 1024, %s50_s14, [#allocation5], %s675_s29, %s675_s29, %s676_s30  }
  0x21   :  { %669 = dma.done.wait [#allocation3], 1024  }
  0x22   :  { %670 = vsyncadd [#allocation3], 4294966272 }
  0x23   :  { %671 = dma.done.wait [#allocation5], 2048  }
  0x24   :  { %672 = vsyncadd [#allocation5], 4294965248  ;;  %v678_v0 = vmov 0.0   ;;  %vm679_vm0 = vmmov 0   ;;  %v577_v1 = vld [vmem:[#allocation2 + $0x38] sm:$0xff]   ;;  %v578_v2 = vld [vmem:[#allocation2 + $0x30] sm:$0xff]  }
  0x25   :  { %510 = vmatprep.subr.bf16.mxu0 %v678_v0  ;;  %526 = vmatprep.mubr.msk.bf16.mxu0 %vm679_vm0, %v678_v0  ;;  %v579_v3 = vld [vmem:[#allocation2 + $0x28] sm:$0xff]   ;;  %v585_v4 = vld [vmem:[#allocation4 + $0x38] sm:$0xff]   ;;  %v580_v5 = vld [vmem:[#allocation2 + $0x20] sm:$0xff]  }
  0x26   :  { %530 = vmatprep.subr.bf16.mxu1 %v678_v0  ;;  %546 = vmatprep.mubr.msk.bf16.mxu1 %vm679_vm0, %v678_v0  ;;  %v586_v6 = vld [vmem:[#allocation4 + $0x30] sm:$0xff]   ;;  %v581_v7 = vld [vmem:[#allocation2 + $0x18] sm:$0xff]   ;;  %v587_v8 = vld [vmem:[#allocation4 + $0x28] sm:$0xff]  }
  0x27   :  { %511 = vmatpush3.bf16.msra.mxu0 %v577_v1  ;;  %531 = vmatpush3.bf16.msra.mxu1 %v585_v4  ;;  %v582_v9 = vld [vmem:[#allocation2 + $0x10] sm:$0xff]   ;;  %v588_v10 = vld [vmem:[#allocation4 + $0x20] sm:$0xff]   ;;  %v583_v11 = vld [vmem:[#allocation2 + $0x8] sm:$0xff]  }
  0x28   :  { %512 = vmatprep.subr.bf16.mxu0 %v678_v0  ;;  %532 = vmatprep.subr.bf16.mxu1 %v678_v0  ;;  %v589_v12 = vld [vmem:[#allocation4 + $0x18] sm:$0xff]   ;;  %v584_v13 = vld [vmem:[#allocation2] sm:$0xff]   ;;  %v69_v15 = vld [vmem:[%s777_s0 + $0x8] sm:$0xff] }
  0x29   :  { %v68_v14 = vld [vmem:[%s777_s0] sm:$0xff]  ;;  %v590_v17 = vld [vmem:[#allocation4 + $0x10] sm:$0xff]   ;;  %v591_v18 = vld [vmem:[#allocation4 + $0x8] sm:$0xff]  }
  0x2a   :  { %v70_v16 = vpack.c.bf16 %v69_v15, %v68_v14  ;;  %v592_v19 = vld [vmem:[#allocation4] sm:$0xff]   ;;  %v593_v20 = vld [vmem:[#allocation6 + $0x38] sm:$0xff]   ;;  %v594_v21 = vld [vmem:[#allocation6 + $0x30] sm:$0xff]  }
  0x2b   :  { %513 = vmatpush3.bf16.msra.mxu0 %v578_v2  ;;  %533 = vmatpush3.bf16.msra.mxu1 %v586_v6  ;;  %v595_v22 = vld [vmem:[#allocation6 + $0x28] sm:$0xff]   ;;  %v596_v23 = vld [vmem:[#allocation6 + $0x20] sm:$0xff]   ;;  %v597_v24 = vld [vmem:[#allocation6 + $0x18] sm:$0xff]  }
  0x2c   :  { %514 = vmatprep.subr.bf16.mxu0 %v678_v0  ;;  %534 = vmatprep.subr.bf16.mxu1 %v678_v0  ;;  %v447_v25 = vld [vmem:[%s779_s2] ss:$0 sm:$0xff]  ;;  %v598_v35 = vld [vmem:[#allocation6 + $0x10] sm:$0xff]   ;;  %v599_v36 = vld [vmem:[#allocation6 + $0x8] sm:$0xff]  }
  0x2d   :  { %v600_v37 = vld [vmem:[#allocation6] sm:$0xff]  }
  0x2e   :  { %v456_v38 = vld [vmem:[%s781_s4] ss:$0 sm:$0xff] }
  0x2f   :  { %515 = vmatpush3.bf16.msra.mxu0 %v579_v3  ;;  %535 = vmatpush3.bf16.msra.mxu1 %v587_v8  ;;  %v465_v48 = vld [vmem:[%s783_s6] ss:$0 sm:$0xff] }
  0x30   :  { %516 = vmatprep.subr.bf16.mxu0 %v678_v0  ;;  %536 = vmatprep.subr.bf16.mxu1 %v678_v0 }
  0x33   :  { %517 = vmatpush3.bf16.msra.mxu0 %v580_v5  ;;  %537 = vmatpush3.bf16.msra.mxu1 %v588_v10 }
  0x34   :  { %518 = vmatprep.subr.bf16.mxu0 %v678_v0  ;;  %538 = vmatprep.subr.bf16.mxu1 %v678_v0 }
  0x37   :  { %519 = vmatpush3.bf16.msra.mxu0 %v581_v7  ;;  %539 = vmatpush3.bf16.msra.mxu1 %v589_v12 }
  0x38   :  { %520 = vmatprep.subr.bf16.mxu0 %v678_v0  ;;  %540 = vmatprep.subr.bf16.mxu1 %v678_v0 }
  0x3b   :  { %521 = vmatpush3.bf16.msra.mxu0 %v582_v9  ;;  %541 = vmatpush3.bf16.msra.mxu1 %v590_v17 }
  0x3c   :  { %522 = vmatprep.subr.bf16.mxu0 %v678_v0  ;;  %542 = vmatprep.subr.bf16.mxu1 %v678_v0 }
  0x3f   :  { %523 = vmatpush3.bf16.msra.mxu0 %v583_v11  ;;  %543 = vmatpush3.bf16.msra.mxu1 %v591_v18 }
  0x40   :  { %524 = vmatprep.subr.bf16.mxu0 %v678_v0  ;;  %544 = vmatprep.subr.bf16.mxu1 %v678_v0 }
  0x43   :  { %525 = vmatpush3.bf16.msra.mxu0 %v584_v13  ;;  %545 = vmatpush3.bf16.msra.mxu1 %v592_v19 }
  0x44   :  { %550 = vmatprep.subr.bf16.mxu0 %v678_v0 }
  0x46   :  { %527 = vmatmul.mubr.bf16.vlgmr.msra.gmra.mxu0 %v70_v16 }
  0x47   :  { %566 = vmatprep.mubr.msk.bf16.mxu0 %vm679_vm0, %v678_v0  ;;  %551 = vmatpush3.bf16.msra.mxu0 %v593_v20 }
  0x48   :  { %552 = vmatprep.subr.bf16.mxu0 %v678_v0 }
  0x4b   :  { %553 = vmatpush3.bf16.msra.mxu0 %v594_v21 }
  0x4c   :  { %554 = vmatprep.subr.bf16.mxu0 %v678_v0 }
  0x4f   :  { %555 = vmatpush3.bf16.msra.mxu0 %v595_v22 }
  0x50   :  { %556 = vmatprep.subr.bf16.mxu0 %v678_v0 }
  0x53   :  { %557 = vmatpush3.bf16.msra.mxu0 %v596_v23 }
  0x54   :  { %558 = vmatprep.subr.bf16.mxu0 %v678_v0 }
  0x57   :  { %559 = vmatpush3.bf16.msra.mxu0 %v597_v24 }
  0x58   :  { %560 = vmatprep.subr.bf16.mxu0 %v678_v0 }
  0x5b   :  { %561 = vmatpush3.bf16.msra.mxu0 %v598_v35 }
  0x5c   :  { %562 = vmatprep.subr.bf16.mxu0 %v678_v0 }
  0x5f   :  { %563 = vmatpush3.bf16.msra.mxu0 %v599_v36 }
  0x60   :  { %564 = vmatprep.subr.bf16.mxu0 %v678_v0 }
  0x63   :  { %565 = vmatpush3.bf16.msra.mxu0 %v600_v37 }
 0x106   :  { %v176_v26 = vpop.f32.mrf.mxu0 }
 0x107   :  { %v177_v28 = vadd.f32 %v447_v25, %v176_v26 }
 0x108   :  { %v528_v27 = vpop.f32.mrf.mxu0 }
 0x109   :  { %v183_v32 = vmax.f32 %v177_v28, 0.0 }
 0x10a   :  { %v179_v29 = vpop.f32.mrf.mxu0 }
 0x10b   :  { %v180_v30 = vadd.f32 %v447_v25, %v179_v29 }
 0x10c   :  { %v529_v31 = vpop.f32.mrf.mxu0 }
 0x10d   :  { %v184_v33 = vmax.f32 %v180_v30, 0.0 }
 0x10f   :  { %v185_v34 = vpack.c.bf16 %v184_v33, %v183_v32 }
 0x111   :  { %547 = vmatmul.mubr.bf16.vlgmr.msra.gmra.mxu1 %v185_v34 }
 0x1d1   :  { %v291_v39 = vpop.f32.mrf.mxu1 }
 0x1d2   :  { %v292_v41 = vadd.f32 %v456_v38, %v291_v39 }
 0x1d3   :  { %v548_v40 = vpop.f32.mrf.mxu1 }
 0x1d4   :  { %v298_v45 = vmax.f32 %v292_v41, 0.0 }
 0x1d5   :  { %v294_v42 = vpop.f32.mrf.mxu1 }
 0x1d6   :  { %v295_v43 = vadd.f32 %v456_v38, %v294_v42 }
 0x1d7   :  { %v549_v44 = vpop.f32.mrf.mxu1 }
 0x1d8   :  { %v299_v46 = vmax.f32 %v295_v43, 0.0 }
 0x1da   :  { %v300_v47 = vpack.c.bf16 %v299_v46, %v298_v45 }
 0x1dc   :  { %567 = vmatmul.mubr.bf16.vlgmr.msra.gmra.mxu0 %v300_v47 }
 0x29c   :  { %v406_v49 = vpop.f32.mrf.mxu0 }
 0x29d   :  { %v407_v50 = vadd.f32 %v465_v48, %v406_v49 }
 0x29e   :  { %v568_v51 = vpop.f32.mrf.mxu0 }
 0x29f   :  { %413 = vmax.xlane.f32.xlu0 %v407_v50 }
 0x2a0   :  { %v409_v52 = vpop.f32.mrf.mxu0 }
 0x2a1   :  { %v410_v53 = vadd.f32 %v465_v48, %v409_v52 }
 0x2a2   :  { %v569_v54 = vpop.f32.mrf.mxu0 }
 0x2a3   :  { %415 = vmax.xlane.f32.xlu0 %v410_v53 }
 0x328   :  { %v414_v55 = vpop.xlane.xlu0 %413 }
 0x329   :  { %v417_v56 = vsub.f32 %v407_v50, %v414_v55 }
 0x32b   :  { %v419_v57 = vmul.f32 1.442695, %v417_v56 }
 0x32c   :  { %v416_v58 = vpop.xlane.xlu0 %415 }
 0x32d   :  { %601 = vpow2.f32 %v419_v57  ;;  %v418_v59 = vsub.f32 %v410_v53, %v416_v58 }
 0x32f   :  { %v421_v60 = vmul.f32 1.442695, %v418_v59 }
 0x331   :  { %603 = vpow2.f32 %v421_v60 }
 0x33a   :  { %v602_v61 = vpop.eup %601 }
 0x33b   :  { %423 = vadd.xlane.f32.xlu1 %v602_v61 }
 0x33e   :  { %v604_v62 = vpop.eup %603 }
 0x33f   :  { %425 = vadd.xlane.f32.xlu1 %v604_v62 }
 0x3c4   :  { %v424_v63 = vpop.xlane.xlu1 %423 }
 0x3c5   :  { %605 = vrcp.f32 %v424_v63 }
 0x3c8   :  { %v426_v0 = vpop.xlane.xlu1 %425 }
 0x3c9   :  { %607 = vrcp.f32 %v426_v0 }
 0x3d2   :  { %v606_v1 = vpop.eup %605 }
 0x3d3   :  { %v428_v3 = vmul.f32 %v606_v1, %v602_v61 }
 0x3d6   :  { %v608_v2 = vpop.eup %607 }
 0x3d7   :  { %v430_v4 = vmul.f32 %v608_v2, %v604_v62 }
 0x3d9   :  { %v481_v5 = vpack.c.bf16 %v430_v4, %v428_v3 }
 0x3db   :  { %482 = vst [vmem:[%s784_s7] sm:$0xff] %v481_v5  }
 0x3dc   :  { %445 = vsyncpa [#allocation3], 1 }
 0x3dd   :  { %446 = vsyncpa [#allocation5], 1 }

</bundles_post_ra>
